<compile_context>
chip_gen: v6e
topology: v6e:2x2x1
jax: 0.10.0
libtpu: 0.0.40
codegen_flags: <defaults>
</compile_context>

<pallas_src>
import functools
import math

import jax
import jax.numpy as jnp
from jax.experimental import pallas as pl
from jax.experimental.pallas import tpu as pltpu


_VMEM_LIMIT = 64 * 1024 * 1024  # bytes; cap well under v7x physical VMEM

# Tile targets (re-derived for the smallest VMEM generation, v7x: 64 MiB).
_TM_TARGET = 256
_TN_TARGET = 512
_TK_TARGET = 512
_LN_ROWS_TARGET = 512
_HEADS_PER_STEP = 4


def _pick_tile(dim, target, mult):
    """Largest divisor of `dim` that is <= target and a multiple of `mult`.

    Falls back to the full dimension (always a legal TPU block shape)."""
    if dim <= target:
        return dim
    t = (target // mult) * mult
    while t >= mult:
        if dim % t == 0:
            return t
        t -= mult
    return dim


def _pick_heads(h, target=_HEADS_PER_STEP):
    hb = min(h, target)
    while h % hb:
        hb -= 1
    return hb


# ----------------------------------------------------------------------------
# Pallas kernels
# ----------------------------------------------------------------------------
def _linear_kernel(x_ref, w_ref, b_ref, o_ref, acc_ref, *, activation):
    @pl.when(pl.program_id(2) == 0)
    def _():
        acc_ref[...] = jnp.zeros_like(acc_ref)

    acc_ref[...] += jnp.dot(x_ref[...], w_ref[...],
                            preferred_element_type=jnp.float32)

    @pl.when(pl.program_id(2) == pl.num_programs(2) - 1)
    def _():
        h = acc_ref[...] + b_ref[...]
        if activation == "gelu":
            # exact (erf-based) GELU, matching torch.nn.functional.gelu default
            h = 0.5 * h * (1.0 + jax.lax.erf(h * 0.7071067811865476))
        o_ref[...] = h.astype(o_ref.dtype)


def _linear_add_ln_kernel(x_ref, w_ref, b_ref, r_ref, g_ref, be_ref,
                          o_ref, acc_ref):
    @pl.when(pl.program_id(1) == 0)
    def _():
        acc_ref[...] = jnp.zeros_like(acc_ref)

    acc_ref[...] += jnp.dot(x_ref[...], w_ref[...],
                            preferred_element_type=jnp.float32)

    @pl.when(pl.program_id(1) == pl.num_programs(1) - 1)
    def _():
        h = acc_ref[...] + b_ref[...] + r_ref[...].astype(jnp.float32)
        mean = jnp.mean(h, axis=-1, keepdims=True)
        var = jnp.mean((h - mean) ** 2, axis=-1, keepdims=True)
        norm = (h - mean) * jax.lax.rsqrt(var + 1e-5)
        o_ref[...] = (norm * g_ref[...] + be_ref[...]).astype(o_ref.dtype)


def _add_layernorm_kernel(x_ref, r_ref, g_ref, b_ref, o_ref):
    h = x_ref[...].astype(jnp.float32) + r_ref[...].astype(jnp.float32)
    mean = jnp.mean(h, axis=-1, keepdims=True)
    var = jnp.mean((h - mean) ** 2, axis=-1, keepdims=True)
    norm = (h - mean) * jax.lax.rsqrt(var + 1e-5)
    o_ref[...] = (norm * g_ref[...] + b_ref[...]).astype(o_ref.dtype)


def _attention_kernel(q_ref, k_ref, v_ref, m_ref, o_ref, *, scale):
    q = q_ref[0].astype(jnp.float32) * scale          # (Hb, T, hd)
    k = k_ref[0].astype(jnp.float32)                  # (Hb, S, hd)
    v = v_ref[0].astype(jnp.float32)                  # (Hb, S, hd)
    # scores: contract last dims, batch over heads (no materialized transpose)
    s = jax.lax.dot_general(q, k, (((2,), (2,)), ((0,), (0,))),
                            preferred_element_type=jnp.float32)  # (Hb, T, S)
    s = s + m_ref[0]                                   # (1, Tm, S) broadcasts
    s_max = jnp.max(s, axis=-1, keepdims=True)
    p = jnp.exp(s - s_max)
    denom = jnp.sum(p, axis=-1, keepdims=True)
    p = p * pl.reciprocal(denom, approx=True)
    o = jax.lax.dot_general(p, v, (((2,), (1,)), ((0,), (0,))),
                            preferred_element_type=jnp.float32)  # (Hb, T, hd)
    o_ref[0] = o.astype(o_ref.dtype)


# ----------------------------------------------------------------------------
# Pallas wrappers
# ----------------------------------------------------------------------------
def linear(x2d, w, b, activation=None):
    """x2d: (M, K); w: (K, N) (pre-transposed vs torch); b: (N,)."""
    M, K = x2d.shape
    N = w.shape[1]
    tm = _pick_tile(M, _TM_TARGET, 8)
    tn = _pick_tile(N, _TN_TARGET, 128)
    tk = _pick_tile(K, _TK_TARGET, 128)
    grid = (M // tm, N // tn, K // tk)
    cost = pl.CostEstimate(
        flops=2 * M * K * N,
        transcendentals=M * N if activation == "gelu" else 0,
        bytes_accessed=4 * (M * K + K * N + M * N))
    return pl.pallas_call(
        functools.partial(_linear_kernel, activation=activation),
        out_shape=jax.ShapeDtypeStruct((M, N), x2d.dtype),
        grid=grid,
        in_specs=[
            pl.BlockSpec((tm, tk), lambda i, j, k: (i, k)),
            pl.BlockSpec((tk, tn), lambda i, j, k: (k, j)),
            pl.BlockSpec((1, tn), lambda i, j, k: (0, j)),
        ],
        out_specs=pl.BlockSpec((tm, tn), lambda i, j, k: (i, j)),
        scratch_shapes=[pltpu.VMEM((tm, tn), jnp.float32)],
        compiler_params=pltpu.CompilerParams(
            dimension_semantics=("parallel", "parallel", "arbitrary"),
            vmem_limit_bytes=_VMEM_LIMIT),
        cost_estimate=cost,
    )(x2d, w, b.reshape(1, N))


def linear_add_ln(x2d, w, b, res2d, gamma, beta):
    """(x2d @ w + b + res2d) -> LayerNorm, fused epilogue. N is kept whole
    (needed for the row-wise LayerNorm); only M and K are tiled."""
    M, K = x2d.shape
    N = w.shape[1]
    tm = _pick_tile(M, _TM_TARGET, 8)
    tk = _pick_tile(K, _TK_TARGET, 128)
    grid = (M // tm, K // tk)
    cost = pl.CostEstimate(
        flops=2 * M * K * N + 10 * M * N,
        transcendentals=0,
        bytes_accessed=4 * (M * K + K * N + 2 * M * N))
    return pl.pallas_call(
        _linear_add_ln_kernel,
        out_shape=jax.ShapeDtypeStruct((M, N), x2d.dtype),
        grid=grid,
        in_specs=[
            pl.BlockSpec((tm, tk), lambda i, k: (i, k)),
            pl.BlockSpec((tk, N), lambda i, k: (k, 0)),
            pl.BlockSpec((1, N), lambda i, k: (0, 0)),
            pl.BlockSpec((tm, N), lambda i, k: (i, 0)),   # residual (resident)
            pl.BlockSpec((1, N), lambda i, k: (0, 0)),
            pl.BlockSpec((1, N), lambda i, k: (0, 0)),
        ],
        out_specs=pl.BlockSpec((tm, N), lambda i, k: (i, 0)),
        scratch_shapes=[pltpu.VMEM((tm, N), jnp.float32)],
        compiler_params=pltpu.CompilerParams(
            dimension_semantics=("parallel", "arbitrary"),
            vmem_limit_bytes=_VMEM_LIMIT),
        cost_estimate=cost,
    )(x2d, w, b.reshape(1, N), res2d, gamma.reshape(1, N), beta.reshape(1, N))


def add_layernorm(x2d, res2d, gamma, beta):
    """Row-tiled (x + residual) -> LayerNorm."""
    M, D = x2d.shape
    tm = _pick_tile(M, _LN_ROWS_TARGET, 8)
    grid = (M // tm,)
    return pl.pallas_call(
        _add_layernorm_kernel,
        out_shape=jax.ShapeDtypeStruct((M, D), x2d.dtype),
        grid=grid,
        in_specs=[
            pl.BlockSpec((tm, D), lambda i: (i, 0)),
            pl.BlockSpec((tm, D), lambda i: (i, 0)),
            pl.BlockSpec((1, D), lambda i: (0, 0)),
            pl.BlockSpec((1, D), lambda i: (0, 0)),
        ],
        out_specs=pl.BlockSpec((tm, D), lambda i: (i, 0)),
        compiler_params=pltpu.CompilerParams(
            dimension_semantics=("parallel",),
            vmem_limit_bytes=_VMEM_LIMIT),
    )(x2d, res2d, gamma.reshape(1, D), beta.reshape(1, D))


def attention_core(qh, kh, vh, mask, scale):
    """qh: (B, H, T, hd); kh, vh: (B, H, S, hd); mask: (B, 1, Tm, S) with
    Tm in {1, T} (broadcast over query positions inside the kernel)."""
    B, H, T, hd = qh.shape
    S = kh.shape[2]
    Tm = mask.shape[2]
    hb = _pick_heads(H)
    grid = (B, H // hb)
    cost = pl.CostEstimate(
        flops=4 * B * H * T * S * hd,
        transcendentals=B * H * T * S,
        bytes_accessed=4 * (B * H * (T + 2 * S) * hd + B * Tm * S + B * H * T * hd))
    return pl.pallas_call(
        functools.partial(_attention_kernel, scale=scale),
        out_shape=jax.ShapeDtypeStruct((B, H, T, hd), qh.dtype),
        grid=grid,
        in_specs=[
            pl.BlockSpec((1, hb, T, hd), lambda b, h: (b, h, 0, 0)),
            pl.BlockSpec((1, hb, S, hd), lambda b, h: (b, h, 0, 0)),
            pl.BlockSpec((1, hb, S, hd), lambda b, h: (b, h, 0, 0)),
            # un-replicated mask: same (B,1,Tm,S) block for every head group
            pl.BlockSpec((1, 1, Tm, S), lambda b, h: (b, 0, 0, 0)),
        ],
        out_specs=pl.BlockSpec((1, hb, T, hd), lambda b, h: (b, h, 0, 0)),
        compiler_params=pltpu.CompilerParams(
            dimension_semantics=("parallel", "parallel"),
            vmem_limit_bytes=_VMEM_LIMIT),
        cost_estimate=cost,
    )(qh, kh, vh, mask)
    # TODO(synk): flash-style S tiling (online softmax) for very long sequences
    #             where the (Hb, T, S) score buffer no longer fits VMEM.


# ----------------------------------------------------------------------------
# BartDecoder forward (glue in plain JAX, hot paths in Pallas)
# ----------------------------------------------------------------------------
def _split_heads(x2d, B, L, H, hd):
    return x2d.reshape(B, L, H, hd).transpose(0, 2, 1, 3)      # (B, H, L, hd)


def _merge_heads(x4d, B, L, H, hd):
    return x4d.transpose(0, 2, 1, 3).reshape(B * L, H * hd)


def _mha(q2d, k2d, v2d, mask, B, Tq, Skv, H, hd):
    qh = _split_heads(q2d, B, Tq, H, hd)
    kh = _split_heads(k2d, B, Skv, H, hd)
    vh = _split_heads(v2d, B, Skv, H, hd)
    o = attention_core(qh, kh, vh, mask, hd ** -0.5)           # (B, H, Tq, hd)
    return _merge_heads(o, B, Tq, H, hd)                       # (B*Tq, H*hd)


def _decoder_layer(hidden, self_mask, enc2d, enc_mask, p, B, T, S, D, H, hd):
    # ---- self-attention (fused QKV) + residual + LN (LN fused in out_proj) --
    sa = p["self_attn"]
    qkv = linear(hidden, sa["wqkv"], sa["bqkv"])               # (B*T, 3D)
    q2d, k2d, v2d = jnp.split(qkv, 3, axis=1)
    ctx = _mha(q2d, k2d, v2d, self_mask, B, T, T, H, hd)
    hidden = linear_add_ln(ctx, sa["wo"], sa["bo"], hidden,
                           p["ln1_g"], p["ln1_b"])

    # ---- cross-attention (fused KV on encoder states) -----------------------
    ca = p["cross_attn"]
    q2d = linear(hidden, ca["wq"], ca["bq"])                   # (B*T, D)
    kv = linear(enc2d, ca["wkv"], ca["bkv"])                   # (B*S, 2D)
    k2d, v2d = jnp.split(kv, 2, axis=1)
    ctx = _mha(q2d, k2d, v2d, enc_mask, B, T, S, H, hd)
    hidden = linear_add_ln(ctx, ca["wo"], ca["bo"], hidden,
                           p["ln2_g"], p["ln2_b"])

    # ---- FFN: fc1+GELU, then fc2 fused with residual+LN ---------------------
    h = linear(hidden, p["w_fc1"], p["b_fc1"], activation="gelu")
    hidden = linear_add_ln(h, p["w_fc2"], p["b_fc2"], hidden,
                           p["ln3_g"], p["ln3_b"])
    return hidden


def bart_decoder_forward(params, input_ids, attention_mask,
                         encoder_hidden_states, encoder_attention_mask, cfg):
    B, T = input_ids.shape
    D, H = cfg["d_model"], cfg["heads"]
    hd = D // H
    S = encoder_hidden_states.shape[1]
    NEG = jnp.finfo(jnp.float32).min

    # embeddings
    tok = params["embed_tokens"][input_ids]                    # (B, T, D)
    pos = params["embed_positions"][jnp.arange(T) + 2]         # offset = 2
    pos = jnp.broadcast_to(pos[None], (B, T, D))

    # self-attention mask: causal + key padding, finite min (no NaN rows)
    ii = jnp.arange(T)[:, None]
    jj = jnp.arange(T)[None, :]
    causal = jnp.where(jj <= ii, 0.0, NEG).astype(jnp.float32)[None, None]
    pad = jnp.where(attention_mask[:, None, None, :] > 0, 0.0, NEG)
    self_mask = jnp.maximum(causal + pad.astype(jnp.float32), NEG)   # (B,1,T,T)

    # cross-attention mask: key padding only, left un-broadcast over T
    enc_mask = jnp.where(encoder_attention_mask[:, None, None, :] > 0,
                         0.0, NEG).astype(jnp.float32)               # (B,1,1,S)

    # embedding layernorm (token + positional fused in the add+LN kernel)
    hidden = add_layernorm(tok.reshape(B * T, D), pos.reshape(B * T, D),
                           params["ln_emb_g"], params["ln_emb_b"])

    enc2d = encoder_hidden_states.reshape(B * S, D)
    for lp in params["layers"]:
        hidden = _decoder_layer(hidden, self_mask, enc2d, enc_mask,
                                lp, B, T, S, D, H, hd)
    return hidden.reshape(B, T, D)


# ----------------------------------------------------------------------------
# Deterministic parameter construction
# ----------------------------------------------------------------------------
def make_params(key, cfg):
    D, F, V, P = cfg["d_model"], cfg["ffn"], cfg["vocab"], cfg["max_pos"]
    std = 0.02

    def nrm(k, shape):
        return jax.random.normal(k, shape, jnp.float32) * std

    keys = iter(jax.random.split(key, 256))
    params = {}
    tok_w = nrm(next(keys), (V, D))
    tok_w = tok_w.at[cfg["pad_id"]].set(0.0)            # padding_idx row zeroed
    params["embed_tokens"] = tok_w
    pos_w = nrm(next(keys), (P + 2, D))
    pos_w = pos_w.at[cfg["pad_id"]].set(0.0)
    params["embed_positions"] = pos_w
    params["ln_emb_g"] = jnp.ones((D,), jnp.float32)
    params["ln_emb_b"] = jnp.zeros((D,), jnp.float32)

    def self_attn_params():
        wq, wk, wv = nrm(next(keys), (D, D)), nrm(next(keys), (D, D)), nrm(next(keys), (D, D))
        return {
            "wqkv": jnp.concatenate([wq, wk, wv], axis=1),   # (D, 3D)
            "bqkv": jnp.zeros((3 * D,), jnp.float32),
            "wo": nrm(next(keys), (D, D)), "bo": jnp.zeros((D,), jnp.float32),
        }

    def cross_attn_params():
        wk, wv = nrm(next(keys), (D, D)), nrm(next(keys), (D, D))
        return {
            "wq": nrm(next(keys), (D, D)), "bq": jnp.zeros((D,), jnp.float32),
            "wkv": jnp.concatenate([wk, wv], axis=1),        # (D, 2D)
            "bkv": jnp.zeros((2 * D,), jnp.float32),
            "wo": nrm(next(keys), (D, D)), "bo": jnp.zeros((D,), jnp.float32),
        }

    layers = []
    for _ in range(cfg["layers"]):
        layers.append({
            "self_attn": self_attn_params(),
            "cross_attn": cross_attn_params(),
            "ln1_g": jnp.ones((D,), jnp.float32), "ln1_b": jnp.zeros((D,), jnp.float32),
            "ln2_g": jnp.ones((D,), jnp.float32), "ln2_b": jnp.zeros((D,), jnp.float32),
            "ln3_g": jnp.ones((D,), jnp.float32), "ln3_b": jnp.zeros((D,), jnp.float32),
            "w_fc1": nrm(next(keys), (D, F)), "b_fc1": jnp.zeros((F,), jnp.float32),
            "w_fc2": nrm(next(keys), (F, D)), "b_fc2": jnp.zeros((D,), jnp.float32),
        })
    params["layers"] = layers
    return params


# ----------------------------------------------------------------------------
if __name__ == "__main__":
    cfg = dict(d_model=32, heads=4, ffn=64, layers=2,
               vocab=50, max_pos=16, pad_id=0)
    B, T, S = 2, 8, 8

    key = jax.random.PRNGKey(0)
    kp, ki, ke = jax.random.split(key, 3)

    params = make_params(kp, cfg)
    input_ids = jax.random.randint(ki, (B, T), 1, cfg["vocab"], dtype=jnp.int32)
    attention_mask = jnp.ones((B, T), jnp.float32)
    encoder_hidden_states = jax.random.normal(ke, (B, S, cfg["d_model"]), jnp.float32)
    encoder_attention_mask = jnp.ones((B, S), jnp.float32)

    out = bart_decoder_forward(params, input_ids, attention_mask,
                               encoder_hidden_states, encoder_attention_mask, cfg)
    out = jax.block_until_ready(out)
    assert out.shape == (B, T, cfg["d_model"])
    assert bool(jnp.all(jnp.isfinite(out)))
    print("KERNEL_OK")
</pallas_src>

<mosaic_0001>
module attributes {stable_mosaic.version = 11 : i64} {
  func.func @_add_layernorm_kernel(%arg0: i32, %arg1: memref<16x32xf32, #tpu.memory_space<vmem>>, %arg2: memref<16x32xf32, #tpu.memory_space<vmem>>, %arg3: memref<1x32xf32, #tpu.memory_space<vmem>>, %arg4: memref<1x32xf32, #tpu.memory_space<vmem>>, %arg5: memref<16x32xf32, #tpu.memory_space<vmem>>) attributes {dimension_semantics = [#tpu.dimension_semantics<parallel>], iteration_bounds = array<i64: 1>, scalar_prefetch = 0 : i64, scratch_operands = 0 : i64, tpu.core_type = #tpu.core_type<tc>, window_params = [{transform_indices = @transform_0, window_bounds = array<i64: 16, 32>}, {transform_indices = @transform_1, window_bounds = array<i64: 16, 32>}, {pipeline_mode = #tpu.pipeline_mode<synchronous>, transform_indices = @transform_2, window_bounds = array<i64: 1, 32>}, {pipeline_mode = #tpu.pipeline_mode<synchronous>, transform_indices = @transform_3, window_bounds = array<i64: 1, 32>}, {transform_indices = @transform_4, window_bounds = array<i64: 16, 32>}]} {
    %c0 = arith.constant 0 : index
    %c0_0 = arith.constant 0 : index
    %0 = vector.load %arg1[%c0, %c0_0] : memref<16x32xf32, #tpu.memory_space<vmem>>, vector<16x32xf32>
    %c0_1 = arith.constant 0 : index
    %c0_2 = arith.constant 0 : index
    %1 = vector.load %arg2[%c0_1, %c0_2] : memref<16x32xf32, #tpu.memory_space<vmem>>, vector<16x32xf32>
    %2 = arith.addf %0, %1 : vector<16x32xf32>
    %cst = arith.constant dense<0.000000e+00> : vector<16xf32>
    %3 = vector.multi_reduction <add>, %2, %cst [1] : vector<16x32xf32> to vector<16xf32>
    %4 = vector.shape_cast %3 : vector<16xf32> to vector<16x1xf32>
    %cst_3 = arith.constant 3.200000e+01 : f32
    %5 = vector.broadcast %cst_3 : f32 to vector<16x1xf32>
    %6 = arith.divf %4, %5 : vector<16x1xf32>
    %7 = vector.broadcast %6 : vector<16x1xf32> to vector<16x32xf32>
    %8 = arith.subf %2, %7 : vector<16x32xf32>
    %9 = arith.mulf %8, %8 : vector<16x32xf32>
    %cst_4 = arith.constant dense<0.000000e+00> : vector<16xf32>
    %10 = vector.multi_reduction <add>, %9, %cst_4 [1] : vector<16x32xf32> to vector<16xf32>
    %11 = vector.shape_cast %10 : vector<16xf32> to vector<16x1xf32>
    %cst_5 = arith.constant 3.200000e+01 : f32
    %12 = vector.broadcast %cst_5 : f32 to vector<16x1xf32>
    %13 = arith.divf %11, %12 : vector<16x1xf32>
    %14 = vector.broadcast %6 : vector<16x1xf32> to vector<16x32xf32>
    %15 = arith.subf %2, %14 : vector<16x32xf32>
    %cst_6 = arith.constant 9.99999974E-6 : f32
    %16 = vector.broadcast %cst_6 : f32 to vector<16x1xf32>
    %17 = arith.addf %13, %16 : vector<16x1xf32>
    %18 = math.rsqrt %17 : vector<16x1xf32>
    %19 = vector.broadcast %18 : vector<16x1xf32> to vector<16x32xf32>
    %20 = arith.mulf %15, %19 : vector<16x32xf32>
    %c0_7 = arith.constant 0 : index
    %c0_8 = arith.constant 0 : index
    %21 = vector.load %arg3[%c0_7, %c0_8] : memref<1x32xf32, #tpu.memory_space<vmem>>, vector<1x32xf32>
    %22 = vector.broadcast %21 : vector<1x32xf32> to vector<16x32xf32>
    %23 = arith.mulf %20, %22 : vector<16x32xf32>
    %c0_9 = arith.constant 0 : index
    %c0_10 = arith.constant 0 : index
    %24 = vector.load %arg4[%c0_9, %c0_10] : memref<1x32xf32, #tpu.memory_space<vmem>>, vector<1x32xf32>
    %25 = vector.broadcast %24 : vector<1x32xf32> to vector<16x32xf32>
    %26 = arith.addf %23, %25 : vector<16x32xf32>
    %c0_11 = arith.constant 0 : index
    %c0_12 = arith.constant 0 : index
    %27 = vector.load %arg5[%c0_11, %c0_12] : memref<16x32xf32, #tpu.memory_space<vmem>>, vector<16x32xf32>
    tpu.vector_store %arg5[%c0_11, %c0_12], %26 {strides = array<i32>} : memref<16x32xf32, #tpu.memory_space<vmem>>, vector<16x32xf32>,
    return
  }
  func.func @transform_0(%arg0: i32) -> (i32, i32) {
    %c0_i32 = arith.constant 0 : i32
    %c0_i32_0 = arith.constant 0 : i32
    return %arg0, %c0_i32 : i32, i32
  }
  func.func @transform_1(%arg0: i32) -> (i32, i32) {
    %c0_i32 = arith.constant 0 : i32
    %c0_i32_0 = arith.constant 0 : i32
    return %arg0, %c0_i32 : i32, i32
  }
  func.func @transform_2(%arg0: i32) -> (i32, i32) {
    %c0_i32 = arith.constant 0 : i32
    %c0_i32_0 = arith.constant 0 : i32
    %c0_i32_1 = arith.constant 0 : i32
    return %c0_i32, %c0_i32_0 : i32, i32
  }
  func.func @transform_3(%arg0: i32) -> (i32, i32) {
    %c0_i32 = arith.constant 0 : i32
    %c0_i32_0 = arith.constant 0 : i32
    %c0_i32_1 = arith.constant 0 : i32
    return %c0_i32, %c0_i32_0 : i32, i32
  }
  func.func @transform_4(%arg0: i32) -> (i32, i32) {
    %c0_i32 = arith.constant 0 : i32
    %c0_i32_0 = arith.constant 0 : i32
    return %arg0, %c0_i32 : i32, i32
  }
}

</mosaic_0001>

<bundles_post_ra>
// kernel: tpu_custom_call.1
= control target key start
LH: loop header
LB: loop body
LE: loop exit
PB: predicated region body
PF: predicated region fallthrough
CT: control target
= control target key end

     0   :  { %9 = vsyncpa [#allocation3], 0  ;;  %s255_s0 = inlined_call_operand.hbm [shape: f32[16,32], index: 0, kind: input, shape index: {}]   ;;  %s256_s1 = inlined_call_operand.hbm [shape: f32[16,32], index: 1, kind: input, shape index: {}]   ;;  %s257_s2 = inlined_call_operand.vmem [shape: f32[1,32], index: 2, kind: input, shape index: {}]   ;;  %s258_s3 = inlined_call_operand.vmem [shape: f32[1,32], index: 3, kind: input, shape index: {}]   ;;  %s259_s4 = inlined_call_operand.hbm [shape: f32[16,32], index: 4, kind: output, shape index: {}]  }
   0x1   :  { %10 = vsyncpa [#allocation6], 0 }
   0x2   :  { %11 = vsyncpa [#allocation4], 0  ;;  %s195_s15 = smov [#allocation2]  }
   0x3   :  { %s17_s16 = sshll.u32 %s195_s15, 4  ;;  %s18_s16 = int_to_ptr.vmem [resolvable:$true] %s17_s16 }
   0x4   :  { %s137_s17 = scalar_lea.vmem %s18_s16, 256  ;;  %p142_p1 = scmp.lt.s32.totalorder %s18_s16, %s18_s16 }
   0x5   :  { %p138_p0 = scmp.ne.s32.totalorder %s18_s16, %s137_s17  ;;  %p143_p2 = scmp.lt.s32.totalorder %s137_s17, %s137_s17 }
   0x7   :  { %p144_p3 = por %p143_p2, %p142_p1 }
   0x9   :  { %p145_p4 = pnand %p144_p3, %p138_p0 }
   0xb   :  { %148 = shalt.err (!%p145_p4)
}
   0xc   :  { %s196_s18 = smov 128   ;;  %s197_s19 = smov 8  }
   0xd   :  { %23 = dma.hbm_to_vmem [thread:$0]  %s255_s0, 256, %s18_s16, [#allocation3], %s196_s18, %s196_s18, %s197_s19  }
   0xe   :  { %s198_s22 = smov [#allocation5]  }
   0xf   :  { %s29_s23 = sshll.u32 %s198_s22, 4  ;;  %s30_s23 = int_to_ptr.vmem [resolvable:$true] %s29_s23 }
  0x10   :  { %s157_s24 = scalar_lea.vmem %s30_s23, 256  ;;  %p162_p6 = scmp.lt.s32.totalorder %s30_s23, %s30_s23 }
  0x11   :  { %p158_p5 = scmp.ne.s32.totalorder %s30_s23, %s157_s24  ;;  %p163_p7 = scmp.lt.s32.totalorder %s157_s24, %s157_s24 }
  0x13   :  { %p164_p8 = por %p163_p7, %p162_p6 }
  0x15   :  { %p165_p9 = pnand %p164_p8, %p158_p5 }
  0x17   :  { %168 = shalt.err (!%p165_p9)
}
  0x18   :  { %35 = dma.hbm_to_vmem [thread:$0]  %s256_s1, 256, %s30_s23, [#allocation6], %s196_s18, %s196_s18, %s197_s19  }
  0x19   :  { %189 = dma.done.wait [#allocation3], 256  }
  0x1a   :  { %190 = vsyncadd [#allocation3], 4294967040 }
  0x1b   :  { %191 = dma.done.wait [#allocation6], 256  }
  0x1c   :  { %192 = vsyncadd [#allocation6], 4294967040  ;;  %v46_v0 = vld [vmem:[#allocation2] sm:$0xff]  ;;  %v48_v1 = vld [vmem:[#allocation5] sm:$0xff]  ;;  %vm52_vm0 = vcmask 261120   ;;  %s199_s29 = smov [#allocation7]  }
  0x1d   :  { %v47_v2 = vld [vmem:[#allocation2 + $0x8] sm:$0xff]  ;;  %v50_v3 = vadd.f32 %v48_v1, %v46_v0  ;;  %v49_v4 = vld [vmem:[#allocation5 + $0x8] sm:$0xff]  ;;  %v118_v25 = vld [vmem:[%s257_s2] ss:$0 sm:$0xff]  ;;  %s105_s30 = sshll.u32 %s199_s29, 4  ;;  %s106_s30 = int_to_ptr.vmem [resolvable:$true] %s105_s30 }
  0x1e   :  { %v51_v5 = vadd.f32 %v49_v4, %v47_v2  ;;  %v119_v27 = vld [vmem:[%s258_s3] ss:$0 sm:$0xff]  ;;  %s169_s5 = scalar_lea.vmem %s106_s30, 256  ;;  %p174_p11 = scmp.lt.s32.totalorder %s106_s30, %s106_s30 }
  0x1f   :  { %v53_v6 = vsel %vm52_vm0, %v50_v3, 0.0  ;;  %p170_p10 = scmp.ne.s32.totalorder %s106_s30, %s169_s5  ;;  %p175_p12 = scmp.lt.s32.totalorder %s169_s5, %s169_s5 }
  0x20   :  { %54 = vadd.xlane.f32.xlu0 %v53_v6  ;;  %v56_v7 = vsel %vm52_vm0, %v51_v5, 0.0 }
  0x21   :  { %p176_p13 = por %p175_p12, %p174_p11 }
  0x23   :  { %p177_p0 = pnand %p176_p13, %p170_p10 }
  0x24   :  { %57 = vadd.xlane.f32.xlu0 %v56_v7 }
  0xa9   :  { %v55_v8 = vpop.xlane.xlu0 %54 }
  0xaa   :  { %v60_v9 = vmul.f32 0.03125, %v55_v8 }
  0xac   :  { %v62_v10 = vsub.f32 %v50_v3, %v60_v9 }
  0xad   :  { %v58_v11 = vpop.xlane.xlu0 %57 }
  0xae   :  { %v61_v12 = vmul.f32 0.03125, %v58_v11  ;;  %v64_v13 = vmul.f32 %v62_v10, %v62_v10 }
  0xb0   :  { %v63_v14 = vsub.f32 %v51_v5, %v61_v12  ;;  %v66_v15 = vsel %vm52_vm0, %v64_v13, 0.0 }
  0xb1   :  { %67 = vadd.xlane.f32.xlu1 %v66_v15 }
  0xb2   :  { %v65_v16 = vmul.f32 %v63_v14, %v63_v14 }
  0xb4   :  { %v69_v17 = vsel %vm52_vm0, %v65_v16, 0.0 }
  0xb5   :  { %70 = vadd.xlane.f32.xlu1 %v69_v17 }
 0x13a   :  { %v68_v18 = vpop.xlane.xlu1 %67 }
 0x13b   :  { %v72_v19 = vmul.f32 0.03125, %v68_v18 }
 0x13d   :  { %v74_v20 = vadd.f32 1e-05, %v72_v19 }
 0x13e   :  { %v71_v21 = vpop.xlane.xlu1 %70 }
 0x13f   :  { %125 = vrsqrt.f32 %v74_v20  ;;  %v73_v22 = vmul.f32 0.03125, %v71_v21 }
 0x141   :  { %v75_v23 = vadd.f32 1e-05, %v73_v22 }
 0x143   :  { %127 = vrsqrt.f32 %v75_v23 }
 0x14c   :  { %v126_v24 = vpop.eup %125 }
 0x14d   :  { %v78_v26 = vmul.f32 %v126_v24, %v62_v10 }
 0x14f   :  { %v87_v28 = vmul.f32 %v118_v25, %v78_v26 }
 0x150   :  { %v128_v29 = vpop.eup %127 }
 0x151   :  { %v79_v30 = vmul.f32 %v128_v29, %v63_v14  ;;  %v96_v31 = vadd.f32 %v119_v27, %v87_v28 }
 0x153   :  { %v88_v32 = vmul.f32 %v118_v25, %v79_v30  ;;  %98 = vst.msk [vmem:[#allocation7] sm:$0xff] %vm52_vm0, %v96_v31 }
 0x155   :  { %v97_v33 = vadd.f32 %v119_v27, %v88_v32 }
 0x157   :  { %99 = vst.msk [vmem:[#allocation7 + $0x8] sm:$0xff] %vm52_vm0, %v97_v33 }
 0x158   :  { %180 = shalt.err (!%p177_p0)
}
 0x159   :  { %111 = dma.vmem_to_hbm [thread:$0]  %s106_s30, 256, %s259_s4, [#allocation4], %s196_s18, %s196_s18, %s197_s19  }
 0x15a   :  { %193 = dma.done.wait [#allocation4], 256  }
 0x15b   :  { %194 = vsyncadd [#allocation4], 4294967040 }
 0x15c   :  { %115 = vsyncpa [#allocation3], 1 }
 0x15d   :  { %116 = vsyncpa [#allocation6], 1 }
 0x15e   :  { %117 = vsyncpa [#allocation4], 1 }

</bundles_post_ra>
